<compile_context>
chip_gen: v7x
topology: tpu7x:2x2x1
jax: 0.10.0
libtpu: 0.0.40
codegen_flags: <defaults>
</compile_context>

<pallas_src>
import functools

import jax
import jax.numpy as jnp
from jax import lax
from jax.experimental import pallas as pl
from jax.experimental.pallas import tpu as pltpu


def _round_up(x: int, m: int) -> int:
    return (x + m - 1) // m * m


def _cdiv(a: int, b: int) -> int:
    return (a + b - 1) // b


def _vmem_capacity_bytes() -> int:
    """Best-effort physical VMEM query; conservative (v7x, 64 MiB) fallback."""
    try:
        info = pltpu.get_tpu_info()
        for attr in ("vmem_capacity_bytes", "vmem_size_bytes", "vmem_bytes"):
            v = getattr(info, attr, None)
            if v:
                return int(v)
    except Exception:
        pass
    return 64 * 1024 * 1024


def _tile_config(compute_dtype):
    """Per-generation (block_n, vmem_limit_bytes) defaults."""
    big_vmem = _vmem_capacity_bytes() >= 96 * 1024 * 1024   # v5e / v6e: 128 MiB
    if compute_dtype == jnp.bfloat16:
        block_n = 5120 if big_vmem else 2560                # v7x: 64 MiB physical
    else:
        block_n = 2560 if big_vmem else 1280
    vmem_limit = (96 if big_vmem else 56) * 1024 * 1024
    return block_n, vmem_limit


def _geglu_kernel(x_ref, wx_ref, wg_ref, bx_ref, bg_ref, o_ref, *, exact_f32):
    # Cast the activation tile to the weight dtype (bf16 fast path feeds the
    # MXU at full rate on v5e/v6e/v7x); accumulate in f32.
    x = x_ref[...].astype(wx_ref.dtype)
    prec = lax.Precision.HIGHEST if exact_f32 else None
    a = jnp.dot(x, wx_ref[...], preferred_element_type=jnp.float32, precision=prec)
    g = jnp.dot(x, wg_ref[...], preferred_element_type=jnp.float32, precision=prec)
    a = a + bx_ref[...]
    g = g + bg_ref[...]
    # Exact GELU: 0.5 * g * (1 + erf(g / sqrt(2)))  (matches F.gelu default).
    inv_sqrt2 = jnp.float32(0.7071067811865476)
    gelu_g = 0.5 * g * (1.0 + lax.erf(g * inv_sqrt2))
    o_ref[...] = (a * gelu_g).astype(o_ref.dtype)


def prepare_geglu_params(weight, bias, *, block_n=None, compute_dtype=jnp.bfloat16):
    """One-time (outside the hot path) split / transpose / pad / cast of the
    nn.Linear(d_in, 2*d_out) parameters.

    Args:
      weight: (2*d_out, d_in)  -- torch nn.Linear.weight layout.
      bias:   (2*d_out,)
      block_n: N tile width that geglu_apply will use (must match). None ->
        per-generation default for `compute_dtype`.
      compute_dtype: matmul operand dtype (jnp.bfloat16 fast path, or
        jnp.float32 for an exact-f32 mode).
    Returns:
      (w_x, w_g, b_x, b_g, d_out) with w_* of shape (d_in, n_pad) in
      `compute_dtype`, b_* of shape (1, n_pad) in float32; n_pad is d_out
      padded to a multiple of 128 (and of block_n when tiled). Padding is zero.
    """
    if block_n is None:
        block_n, _ = _tile_config(compute_dtype)
    assert block_n % 128 == 0, "block_n must be a multiple of 128"

    two_d_out, _ = weight.shape
    d_out = two_d_out // 2

    w_t = jnp.asarray(weight).T                  # (d_in, 2*d_out), done once
    w_x, w_g = w_t[:, :d_out], w_t[:, d_out:]    # value / gate weights
    b_x, b_g = jnp.asarray(bias)[:d_out], jnp.asarray(bias)[d_out:]

    n_pad = _round_up(d_out, 128)                # always lane-dense
    if n_pad > block_n:
        n_pad = _round_up(d_out, block_n)        # evenly tileable by block_n
    pad = n_pad - d_out
    if pad:
        w_x = jnp.pad(w_x, ((0, 0), (0, pad)))
        w_g = jnp.pad(w_g, ((0, 0), (0, pad)))
        b_x = jnp.pad(b_x, ((0, pad),))
        b_g = jnp.pad(b_g, ((0, pad),))

    w_x = w_x.astype(compute_dtype)
    w_g = w_g.astype(compute_dtype)
    b_x = b_x.astype(jnp.float32).reshape(1, -1)
    b_g = b_g.astype(jnp.float32).reshape(1, -1)
    return w_x, w_g, b_x, b_g, d_out


@functools.partial(
    jax.jit,
    static_argnames=("d_out", "block_m", "block_n", "vmem_limit_bytes", "out_dtype"),
)
def _geglu_apply_impl(x, w_x, w_g, b_x, b_g, *, d_out, block_m, block_n,
                      vmem_limit_bytes, out_dtype):
    *lead, d_in = x.shape
    n_pad = w_x.shape[1]
    exact_f32 = (w_x.dtype == jnp.float32)

    # --- N tiling -------------------------------------------------------------
    bn = n_pad if n_pad <= block_n else block_n
    assert bn % 128 == 0 and n_pad % bn == 0, \
        "params were prepared with a different block_n"
    num_n = n_pad // bn

    # --- M tiling (adaptive for ragged row counts; no near-empty last tile) ---
    m = 1
    for s in lead:
        m *= s
    x2d = x.reshape(m, d_in)

    bm_cap = max(8, _round_up(min(block_m, m), 8))
    num_m = _cdiv(m, bm_cap)
    bm = _round_up(_cdiv(m, num_m), 8)
    m_pad = _round_up(m, bm)
    if m_pad != m:
        x2d = jnp.pad(x2d, ((0, m_pad - m), (0, 0)))
    num_m = m_pad // bm

    # Grid = (N outer, M inner): the weight block index is constant over the
    # inner M loop, so each weight tile is DMA'd from HBM exactly once per N
    # tile; x tiles are re-read num_n times.  N is the "parallel" axis so the
    # v7x megacore split lands on N (weights never duplicated across TCs).
    grid = (num_n, num_m)

    out2d = pl.pallas_call(
        functools.partial(_geglu_kernel, exact_f32=exact_f32),
        out_shape=jax.ShapeDtypeStruct((m_pad, n_pad), out_dtype),
        grid_spec=pltpu.PrefetchScalarGridSpec(
            num_scalar_prefetch=0,
            grid=grid,
            in_specs=[
                pl.BlockSpec((bm, d_in), lambda j, i: (i, 0)),   # x rows tile
                pl.BlockSpec((d_in, bn), lambda j, i: (0, j)),   # W_x N tile
                pl.BlockSpec((d_in, bn), lambda j, i: (0, j)),   # W_gate N tile
                pl.BlockSpec((1, bn), lambda j, i: (0, j)),      # b_x
                pl.BlockSpec((1, bn), lambda j, i: (0, j)),      # b_gate
            ],
            out_specs=pl.BlockSpec((bm, bn), lambda j, i: (i, j)),
        ),
        compiler_params=pltpu.CompilerParams(
            dimension_semantics=("parallel", "arbitrary"),
            vmem_limit_bytes=vmem_limit_bytes,
        ),
    )(x2d, w_x, w_g, b_x, b_g)

    return out2d[:m, :d_out].reshape(*lead, d_out)


def geglu_apply(x, w_x, w_g, b_x, b_g, *, d_out, block_m=512, block_n=None,
                vmem_limit_bytes=None, out_dtype=None):
    """GeGLU forward with pre-prepared params.

    x: (..., d_in);  w_*: (d_in, n_pad);  b_*: (1, n_pad)  ->  (..., d_out)
    """
    cfg_bn, cfg_vmem = _tile_config(w_x.dtype)
    block_n = cfg_bn if block_n is None else block_n
    vmem_limit_bytes = cfg_vmem if vmem_limit_bytes is None else vmem_limit_bytes
    out_dtype = x.dtype if out_dtype is None else out_dtype
    return _geglu_apply_impl(
        x, w_x, w_g, b_x, b_g, d_out=d_out, block_m=block_m, block_n=block_n,
        vmem_limit_bytes=vmem_limit_bytes, out_dtype=jnp.dtype(out_dtype).name and out_dtype)


def geglu(x, weight, bias, *, compute_dtype=jnp.bfloat16, block_m=512,
          block_n=None, out_dtype=None):
    """Convenience wrapper matching the torch module's (x, weight, bias) API.

    Prefer prepare_geglu_params() once + geglu_apply() per call in real use.
    """
    w_x, w_g, b_x, b_g, d_out = prepare_geglu_params(
        weight, bias, block_n=block_n, compute_dtype=compute_dtype)
    return geglu_apply(x, w_x, w_g, b_x, b_g, d_out=d_out, block_m=block_m,
                       block_n=block_n, out_dtype=out_dtype)


if __name__ == "__main__":
    key = jax.random.PRNGKey(0)
    k_x, k_w, k_b = jax.random.split(key, 3)

    batch, seq, d_in, d_out = 2, 8, 32, 32

    x = jax.random.normal(k_x, (batch, seq, d_in), dtype=jnp.float32)
    # Deterministic synthetic nn.Linear(d_in, 2*d_out) parameters.
    weight = jax.random.normal(k_w, (2 * d_out, d_in), dtype=jnp.float32) * 0.05
    bias = jax.random.normal(k_b, (2 * d_out,), dtype=jnp.float32) * 0.05

    # Pure-JAX reference of the module's semantics (exact erf GELU).
    proj = jnp.einsum("bsd,nd->bsn", x, weight,
                      precision=lax.Precision.HIGHEST) + bias
    val, gate = proj[..., :d_out], proj[..., d_out:]
    ref = val * jax.nn.gelu(gate, approximate=False)

    # --- default bf16 fast path ------------------------------------------------
    w_x, w_g, b_x, b_g, d_out_p = prepare_geglu_params(weight, bias)  # bf16 weights
    out_bf16 = geglu_apply(x, w_x, w_g, b_x, b_g, d_out=d_out_p)
    jax.block_until_ready(out_bf16)
    assert out_bf16.shape == (batch, seq, d_out)
    assert out_bf16.dtype == x.dtype
    assert jnp.allclose(out_bf16, ref, atol=2e-2, rtol=2e-2)

    # --- exact-f32 mode ----------------------------------------------------------
    w_x32, w_g32, b_x32, b_g32, d_out_p = prepare_geglu_params(
        weight, bias, compute_dtype=jnp.float32)
    out_f32 = geglu_apply(x, w_x32, w_g32, b_x32, b_g32, d_out=d_out_p)
    jax.block_until_ready(out_f32)
    assert jnp.allclose(out_f32, ref, atol=1e-5, rtol=1e-5)

    print("KERNEL_OK")
</pallas_src>

<mosaic_0001>
module attributes {stable_mosaic.version = 11 : i64} {
  func.func @_geglu_kernel(%arg0: i32, %arg1: i32, %arg2: memref<16x32xf32, #tpu.memory_space<vmem>>, %arg3: memref<32x128xbf16, #tpu.memory_space<vmem>>, %arg4: memref<32x128xbf16, #tpu.memory_space<vmem>>, %arg5: memref<1x128xf32, #tpu.memory_space<vmem>>, %arg6: memref<1x128xf32, #tpu.memory_space<vmem>>, %arg7: memref<16x128xf32, #tpu.memory_space<vmem>>) attributes {dimension_semantics = [#tpu.dimension_semantics<parallel>, #tpu.dimension_semantics<arbitrary>], iteration_bounds = array<i64: 1, 1>, scalar_prefetch = 0 : i64, scratch_operands = 0 : i64, tpu.core_type = #tpu.core_type<tc>, window_params = [{transform_indices = @transform_0, window_bounds = array<i64: 16, 32>}, {transform_indices = @transform_1, window_bounds = array<i64: 32, 128>}, {transform_indices = @transform_2, window_bounds = array<i64: 32, 128>}, {transform_indices = @transform_3, window_bounds = array<i64: 1, 128>}, {transform_indices = @transform_4, window_bounds = array<i64: 1, 128>}, {transform_indices = @transform_5, window_bounds = array<i64: 16, 128>}]} {
    %c0 = arith.constant 0 : index
    %c0_0 = arith.constant 0 : index
    %0 = vector.load %arg2[%c0, %c0_0] : memref<16x32xf32, #tpu.memory_space<vmem>>, vector<16x32xf32>
    %1 = arith.truncf %0 : vector<16x32xf32> to vector<16x32xbf16>
    %c0_1 = arith.constant 0 : index
    %c0_2 = arith.constant 0 : index
    %2 = vector.load %arg3[%c0_1, %c0_2] : memref<32x128xbf16, #tpu.memory_space<vmem>>, vector<32x128xbf16>
    %cst = arith.constant dense<0.000000e+00> : vector<16x128xf32>
    %3 = tpu.matmul %1, %2, %cst {dimension_numbers = #tpu.dot_dimension_numbers<[1], [0], [0], [1], [0, 0, 1, 1], [], []>} : vector<16x32xbf16>, vector<32x128xbf16>, vector<16x128xf32> -> vector<16x128xf32>
    %c0_3 = arith.constant 0 : index
    %c0_4 = arith.constant 0 : index
    %4 = vector.load %arg4[%c0_3, %c0_4] : memref<32x128xbf16, #tpu.memory_space<vmem>>, vector<32x128xbf16>
    %cst_5 = arith.constant dense<0.000000e+00> : vector<16x128xf32>
    %5 = tpu.matmul %1, %4, %cst_5 {dimension_numbers = #tpu.dot_dimension_numbers<[1], [0], [0], [1], [0, 0, 1, 1], [], []>} : vector<16x32xbf16>, vector<32x128xbf16>, vector<16x128xf32> -> vector<16x128xf32>
    %c0_6 = arith.constant 0 : index
    %c0_7 = arith.constant 0 : index
    %6 = vector.load %arg5[%c0_6, %c0_7] : memref<1x128xf32, #tpu.memory_space<vmem>>, vector<1x128xf32>
    %7 = vector.broadcast %6 : vector<1x128xf32> to vector<16x128xf32>
    %8 = arith.addf %3, %7 : vector<16x128xf32>
    %c0_8 = arith.constant 0 : index
    %c0_9 = arith.constant 0 : index
    %9 = vector.load %arg6[%c0_8, %c0_9] : memref<1x128xf32, #tpu.memory_space<vmem>>, vector<1x128xf32>
    %10 = vector.broadcast %9 : vector<1x128xf32> to vector<16x128xf32>
    %11 = arith.addf %5, %10 : vector<16x128xf32>
    %cst_10 = arith.constant 5.000000e-01 : f32
    %12 = vector.broadcast %cst_10 : f32 to vector<16x128xf32>
    %13 = arith.mulf %12, %11 : vector<16x128xf32>
    %cst_11 = arith.constant 0.707106769 : f32
    %14 = vector.broadcast %cst_11 : f32 to vector<16x128xf32>
    %15 = arith.mulf %11, %14 : vector<16x128xf32>
    %16 = math.erf %15 : vector<16x128xf32>
    %cst_12 = arith.constant 1.000000e+00 : f32
    %17 = vector.broadcast %cst_12 : f32 to vector<16x128xf32>
    %18 = arith.addf %17, %16 : vector<16x128xf32>
    %19 = arith.mulf %13, %18 : vector<16x128xf32>
    %20 = arith.mulf %8, %19 : vector<16x128xf32>
    %c0_13 = arith.constant 0 : index
    %c0_14 = arith.constant 0 : index
    %21 = vector.load %arg7[%c0_13, %c0_14] : memref<16x128xf32, #tpu.memory_space<vmem>>, vector<16x128xf32>
    tpu.vector_store %arg7[%c0_13, %c0_14], %20 {strides = array<i32>} : memref<16x128xf32, #tpu.memory_space<vmem>>, vector<16x128xf32>,
    return
  }
  func.func @transform_0(%arg0: i32, %arg1: i32) -> (i32, i32) {
    %c0_i32 = arith.constant 0 : i32
    %c0_i32_0 = arith.constant 0 : i32
    return %arg1, %c0_i32 : i32, i32
  }
  func.func @transform_1(%arg0: i32, %arg1: i32) -> (i32, i32) {
    %c0_i32 = arith.constant 0 : i32
    %c0_i32_0 = arith.constant 0 : i32
    return %c0_i32, %arg0 : i32, i32
  }
  func.func @transform_2(%arg0: i32, %arg1: i32) -> (i32, i32) {
    %c0_i32 = arith.constant 0 : i32
    %c0_i32_0 = arith.constant 0 : i32
    return %c0_i32, %arg0 : i32, i32
  }
  func.func @transform_3(%arg0: i32, %arg1: i32) -> (i32, i32) {
    %c0_i32 = arith.constant 0 : i32
    %c0_i32_0 = arith.constant 0 : i32
    return %c0_i32, %arg0 : i32, i32
  }
  func.func @transform_4(%arg0: i32, %arg1: i32) -> (i32, i32) {
    %c0_i32 = arith.constant 0 : i32
    %c0_i32_0 = arith.constant 0 : i32
    return %c0_i32, %arg0 : i32, i32
  }
  func.func @transform_5(%arg0: i32, %arg1: i32) -> (i32, i32) {
    %c0_i32 = arith.constant 0 : i32
    return %arg1, %arg0 : i32, i32
  }
}

</mosaic_0001>

<bundles_post_ra>
// kernel: _geglu_apply_impl.1
= control target key start
LH: loop header
LB: loop body
LE: loop exit
PB: predicated region body
PF: predicated region fallthrough
CT: control target
= control target key end

     0   :  { %10 = vsyncpa [#allocation3], 0  ;;  %s427_s0 = inlined_call_operand.hbm [shape: f32[16,32], index: 0, kind: input, shape index: {}]   ;;  %s428_s1 = inlined_call_operand.hbm [shape: bf16[32,128], index: 1, kind: input, shape index: {}]   ;;  %s429_s2 = inlined_call_operand.hbm [shape: bf16[32,128], index: 2, kind: input, shape index: {}]   ;;  %s430_s3 = inlined_call_operand.vmem [shape: f32[1,128], index: 3, kind: input, shape index: {}]   ;;  %s431_s4 = inlined_call_operand.vmem [shape: f32[1,128], index: 4, kind: input, shape index: {}]   ;;  %s432_s5 = inlined_call_operand.vmem [shape: f32[16,128], index: 5, kind: output, shape index: {}]  }
   0x1   :  { %11 = vsyncpa [#allocation5], 0  ;;  %s334_s18 = smov [#allocation4]   ;;  %s264_s22 = scalar_lea.hbm %s428_s1, 256 }
   0x2   :  { %s29_s19 = sshll.u32 %s334_s18, 4  ;;  %p265_p0 = scmp.ne.s32.totalorder %s428_s1, %s264_s22  ;;  %s30_s19 = int_to_ptr.vmem [resolvable:$true] %s29_s19 }
   0x3   :  { %p268_p1 = scmp.lt.u32.totalorder %s264_s22, %s428_s1 }
   0x5   :  { %p270_p2 = pnand %p268_p1, %p265_p0 }
   0x7   :  { %273 = shalt.err (!%p270_p2)
}
   0x8   :  { %s274_s27 = scalar_lea.vmem %s30_s19, 256  ;;  %p279_p4 = scmp.lt.s32.totalorder %s30_s19, %s30_s19 }
   0x9   :  { %p275_p3 = scmp.ne.s32.totalorder %s30_s19, %s274_s27  ;;  %p280_p5 = scmp.lt.s32.totalorder %s274_s27, %s274_s27 }
   0xb   :  { %p281_p6 = por %p280_p5, %p279_p4 }
   0xd   :  { %p282_p7 = pnand %p281_p6, %p275_p3 }
   0xf   :  { %285 = shalt.err (!%p282_p7)
}
  0x10   :  { %s335_s28 = smov 64   ;;  %s336_s29 = smov 4  }
  0x11   :  { %35 = dma.hbm_to_vmem [thread:$0]  %s428_s1, 256, %s30_s19, [#allocation5], %s335_s28, %s335_s28, %s336_s29  }
  0x12   :  { %s337_s7 = smov [#allocation2]   ;;  %s286_s11 = scalar_lea.hbm %s427_s0, 256 }
  0x13   :  { %s17_s8 = sshll.u32 %s337_s7, 4  ;;  %p287_p8 = scmp.ne.s32.totalorder %s427_s0, %s286_s11  ;;  %s18_s8 = int_to_ptr.vmem [resolvable:$true] %s17_s8 }
  0x14   :  { %p290_p9 = scmp.lt.u32.totalorder %s286_s11, %s427_s0 }
  0x16   :  { %p292_p10 = pnand %p290_p9, %p287_p8 }
  0x18   :  { %295 = shalt.err (!%p292_p10)
}
  0x19   :  { %s296_s16 = scalar_lea.vmem %s18_s8, 256  ;;  %p301_p12 = scmp.lt.s32.totalorder %s18_s8, %s18_s8 }
  0x1a   :  { %p297_p11 = scmp.ne.s32.totalorder %s18_s8, %s296_s16  ;;  %p302_p13 = scmp.lt.s32.totalorder %s296_s16, %s296_s16 }
  0x1c   :  { %p303_p0 = por %p302_p13, %p301_p12 }
  0x1e   :  { %p304_p1 = pnand %p303_p0, %p297_p11 }
  0x20   :  { %307 = shalt.err (!%p304_p1)
}
  0x21   :  { %s338_s1 = smov 128   ;;  %s339_s17 = smov 8  }
  0x22   :  { %23 = dma.hbm_to_vmem [thread:$0]  %s427_s0, 256, %s18_s8, [#allocation3], %s338_s1, %s338_s1, %s339_s17  }
  0x23   :  { %s340_s20 = smov [#allocation6]   ;;  %s308_s24 = scalar_lea.hbm %s429_s2, 256 }
  0x24   :  { %s41_s21 = sshll.u32 %s340_s20, 4  ;;  %p309_p2 = scmp.ne.s32.totalorder %s429_s2, %s308_s24  ;;  %s42_s21 = int_to_ptr.vmem [resolvable:$true] %s41_s21 }
  0x25   :  { %p312_p3 = scmp.lt.u32.totalorder %s308_s24, %s429_s2 }
  0x27   :  { %p314_p4 = pnand %p312_p3, %p309_p2 }
  0x29   :  { %317 = shalt.err (!%p314_p4)
}
  0x2a   :  { %s318_s6 = scalar_lea.vmem %s42_s21, 256  ;;  %p323_p6 = scmp.lt.s32.totalorder %s42_s21, %s42_s21 }
  0x2b   :  { %p319_p5 = scmp.ne.s32.totalorder %s42_s21, %s318_s6  ;;  %p324_p7 = scmp.lt.s32.totalorder %s318_s6, %s318_s6 }
  0x2d   :  { %p325_p8 = por %p324_p7, %p323_p6 }
  0x2f   :  { %p326_p9 = pnand %p325_p8, %p319_p5 }
  0x31   :  { %329 = shalt.err (!%p326_p9)
}
  0x32   :  { %47 = dma.hbm_to_vmem [thread:$0]  %s429_s2, 256, %s42_s21, [#allocation5], %s335_s28, %s335_s28, %s336_s29  }
  0x33   :  { %330 = dma.done.wait [#allocation3], 256  }
  0x34   :  { %331 = vsyncadd [#allocation3], 4294967040 }
  0x35   :  { %332 = dma.done.wait [#allocation5], 512  }
  0x36   :  { %333 = vsyncadd [#allocation5], 4294966784  ;;  %v341_v0 = vmov 0.0   ;;  %vm342_vm0 = vmmov 0   ;;  %v256_v1 = vld [vmem:[#allocation6] sm:$0xff]   ;;  %v257_v2 = vld [vmem:[#allocation6 + $0x8] sm:$0xff]  }
  0x37   :  { %239 = vmatprep.subr.bf16.mxu1 %v341_v0  ;;  %243 = vmatprep.mubr.msk.bf16.mxu1 %vm342_vm0, %v341_v0  ;;  %v62_v3 = vld [vmem:[#allocation2] sm:$0xff]  ;;  %v63_v4 = vld [vmem:[#allocation2 + $0x8] sm:$0xff]  ;;  %v258_v5 = vld [vmem:[#allocation4] sm:$0xff]   ;;  %vm92_vm1 = vcmask 261120  }
  0x38   :  { %231 = vmatprep.subr.bf16.mxu0 %v341_v0  ;;  %235 = vmatprep.mubr.msk.bf16.mxu0 %vm342_vm0, %v341_v0  ;;  %v64_v6 = vpack.c.bf16 %v63_v4, %v62_v3  ;;  %v259_v7 = vld [vmem:[#allocation4 + $0x8] sm:$0xff]   ;;  %v221_v8 = vld [vmem:[%s431_s4] ss:$0 sm:$0xff] }
  0x39   :  { %240 = vmatpush3.bf16.msra.mxu1 %v256_v1  ;;  %232 = vmatpush3.bf16.msra.mxu0 %v258_v5  ;;  %v217_v21 = vld [vmem:[%s430_s3] ss:$0 sm:$0xff] }
  0x3a   :  { %241 = vmatprep.subr.bf16.mxu1 %v341_v0  ;;  %233 = vmatprep.subr.bf16.mxu0 %v341_v0 }
  0x3d   :  { %242 = vmatpush3.bf16.msra.mxu1 %v257_v2  ;;  %234 = vmatpush3.bf16.msra.mxu0 %v259_v7 }
  0x40   :  { %244 = vmatmul.mubr.msk.bf16.vlgmr.msra.gmra.mrb[0].mxu1 %vm92_vm1, %v64_v6  ;;  %236 = vmatmul.mubr.msk.bf16.vlgmr.msra.gmra.mrb[0].mxu0 %vm92_vm1, %v64_v6 }
 0x113   :  { %v190_v9 = vpop.f32.mrb[0].mxu1  ;;  %v130_v16 = vpop.f32.mrb[0].mxu0 }
 0x114   :  { %v191_v10 = vadd.f32 %v221_v8, %v190_v9  ;;  %v245_v11 = vpop.f32.mrb[1].mxu1  ;;  %v237_v17 = vpop.f32.mrb[1].mxu0  ;;  %v131_v25 = vadd.f32 %v217_v21, %v130_v16 }
 0x115   :  { %v193_v12 = vpop.f32.mrb[2].mxu1  ;;  %v133_v19 = vpop.f32.mrb[2].mxu0 }
 0x116   :  { %v199_v13 = vmul.f32 0.70710677, %v191_v10  ;;  %v194_v14 = vadd.f32 %v221_v8, %v193_v12  ;;  %v246_v15 = vpop.f32.mrb[3].mxu1  ;;  %v238_v20 = vpop.f32.mrb[3].mxu0  ;;  %v197_v23 = vmul.f32 0.5, %v191_v10  ;;  %v134_v31 = vadd.f32 %v217_v21, %v133_v19 }
 0x118   :  { %260 = verf.f32 %v199_v13  ;;  %v200_v18 = vmul.f32 0.70710677, %v194_v14  ;;  %v198_v27 = vmul.f32 0.5, %v194_v14 }
 0x11a   :  { %262 = verf.f32 %v200_v18 }
 0x122   :  { %v261_v22 = vpop.eup %260 }
 0x123   :  { %v203_v24 = vadd.f32 1.0, %v261_v22 }
 0x124   :  { %v263_v26 = vpop.eup %262 }
 0x125   :  { %v204_v28 = vadd.f32 1.0, %v263_v26  ;;  %v205_v29 = vmul.f32 %v203_v24, %v197_v23 }
 0x127   :  { %v207_v30 = vmul.f32 %v205_v29, %v131_v25  ;;  %v206_v32 = vmul.f32 %v204_v28, %v198_v27 }
 0x129   :  { %209 = vst [vmem:[%s432_s5] sm:$0xff] %v207_v30  ;;  %v208_v33 = vmul.f32 %v206_v32, %v134_v31 }
 0x12b   :  { %210 = vst [vmem:[%s432_s5 + $0x8] sm:$0xff] %v208_v33 }
 0x12c   :  { %215 = vsyncpa [#allocation3], 1 }
 0x12d   :  { %216 = vsyncpa [#allocation5], 1 }

</bundles_post_ra>
